<compile_context>
chip_gen: v7x
topology: tpu7x:2x2x1
jax: 0.10.0
libtpu: 0.0.40
codegen_flags: <defaults>
</compile_context>

<pallas_src>
import math

import jax
import jax.numpy as jnp
from jax.experimental import pallas as pl
from jax.experimental.pallas import tpu as pltpu


# >= 8 total grid steps keeps >= 4 steps per TensorCore once the "parallel"
# row axis is sharded across v7x's two cores, so both stay double-buffered.
_MIN_GRID_STEPS = 8


def _tpu_vmem_capacity_bytes():
    try:
        return int(pltpu.get_tpu_info().vmem_capacity_bytes)
    except Exception:
        # Conservative default: v7x per-TensorCore VMEM.
        return 64 * 1024 * 1024


def _budgets():
    """(tile_budget_bytes, vmem_limit_bytes) picked per TPU generation."""
    vmem = _tpu_vmem_capacity_bytes()
    if vmem >= 100 * 1024 * 1024:          # v5e / v6e: 128 MiB physical VMEM
        return 8 * 1024 * 1024, 96 * 1024 * 1024
    return 4 * 1024 * 1024, 48 * 1024 * 1024   # v7x (64 MiB) / unknown


def _row_tile(krows, row_bytes_f32, packing, tile_budget_bytes):
    """Largest packing-aligned row tile within budget that keeps >= 8 steps."""
    if krows <= packing:
        return krows                       # full extent is always a legal dim
    budget_rows = max(packing,
                      (tile_budget_bytes // row_bytes_f32) // packing * packing)
    steps_rows = max(packing,
                     (krows // _MIN_GRID_STEPS) // packing * packing)
    return min(budget_rows, steps_rows)


# --------------------------------------------------------------------------
# Kernels
# --------------------------------------------------------------------------

def _l2norm_row_kernel(x_ref, o_ref):
    # One whole feature row per kernel row: cross-lane reduce on the XLU,
    # rsqrt on the EUP (separate bundle slot), multiply on the VPU.
    x = x_ref[...].astype(jnp.float32)
    ss = jnp.sum(x * x, axis=-1, keepdims=True)
    # PyTorch's x / x.norm() has no epsilon; reproduce exactly.
    o_ref[...] = (x * jax.lax.rsqrt(ss)).astype(o_ref.dtype)


def _l2norm_folded_kernel(mask_ref, x_ref, o_ref):
    # `128 // feat` original rows are packed along the lane axis (block last
    # dim == 128). The segmented sum of squares is a block-diagonal 0/1-mask
    # matmul on the otherwise-idle MXU; the mask is a resident VMEM input.
    # TODO(synk): on v5e the HIGHEST (multi-pass) f32 matmul is close to the
    # HBM roofline; per-operand precision on the mask side would halve the
    # pass count but is not reliably lowered by Mosaic today.
    x = x_ref[...].astype(jnp.float32)
    sq = x * x
    ss = jnp.dot(sq, mask_ref[...], preferred_element_type=jnp.float32,
                 precision=jax.lax.Precision.HIGHEST)
    o_ref[...] = (x * jax.lax.rsqrt(ss)).astype(o_ref.dtype)


def _l2norm_sublane_kernel(x_ref, o_ref):
    # Block = (1, feat, tn): reduce along the sublane axis, no transposes.
    x = x_ref[...].astype(jnp.float32)
    ss = jnp.sum(x * x, axis=1, keepdims=True)
    o_ref[...] = (x * jax.lax.rsqrt(ss)).astype(o_ref.dtype)


# --------------------------------------------------------------------------
# Wrappers
# --------------------------------------------------------------------------

def _l2norm_last(x, out_dtype, tile_budget_bytes, vmem_limit_bytes):
    orig_shape = x.shape
    feat = orig_shape[-1]
    rows = math.prod(orig_shape[:-1]) if len(orig_shape) > 1 else 1

    itemsize = jnp.dtype(x.dtype).itemsize
    packing = max(8, 32 // itemsize)       # sublane packing: 8 f32 / 16 bf16

    # Fold narrow feature dims into lane-dense 128-wide blocks when possible.
    fold = 1
    if feat < 128 and 128 % feat == 0 and rows % (128 // feat) == 0:
        fold = 128 // feat
    # TODO(synk): when rows % (128//feat) != 0, pad rows (or run a tiny tail
    # call) so ragged narrow-feature shapes also stay lane-dense instead of
    # falling back to masked vst.msk stores.
    kf = feat * fold
    krows = rows // fold
    x2d = x.reshape(krows, kf)

    # Budget on the f32-expanded working set so bf16 inputs don't overshoot.
    row_bytes = kf * max(itemsize, 4)
    tm = _row_tile(krows, row_bytes, packing, tile_budget_bytes)
    grid = (pl.cdiv(krows, tm),)
    # TODO(synk): for feature dims so wide that even a packing-row block
    # exceeds the budget, add a second "arbitrary" grid axis over feature
    # chunks with a (tm, 1) f32 sum-of-squares accumulator (two-pass rsqrt).

    if fold > 1:
        # Block-diagonal 0/1 mask: built once on the host, VMEM-resident
        # across all grid steps (index_map is constant).
        seg_ids = jnp.arange(kf, dtype=jnp.int32) // feat
        mask = (seg_ids[:, None] == seg_ids[None, :]).astype(jnp.float32)
        kernel = _l2norm_folded_kernel
        args = (mask, x2d)
        in_specs = [pl.BlockSpec((kf, kf), lambda i: (0, 0)),
                    pl.BlockSpec((tm, kf), lambda i: (i, 0))]
    else:
        kernel = _l2norm_row_kernel
        args = (x2d,)
        in_specs = [pl.BlockSpec((tm, kf), lambda i: (i, 0))]

    out = pl.pallas_call(
        kernel,
        out_shape=jax.ShapeDtypeStruct((krows, kf), out_dtype),
        grid_spec=pltpu.PrefetchScalarGridSpec(
            num_scalar_prefetch=0,
            grid=grid,
            in_specs=in_specs,
            out_specs=pl.BlockSpec((tm, kf), lambda i: (i, 0)),
        ),
        compiler_params=pltpu.CompilerParams(
            dimension_semantics=("parallel",),
            vmem_limit_bytes=vmem_limit_bytes,
        ),
    )(*args)

    return out.reshape(orig_shape)


def _l2norm_non_last(x, dim, out_dtype, tile_budget_bytes, vmem_limit_bytes):
    # Reduce along the sublane axis in-kernel; the reshape below is free
    # (contiguous), so no HBM transposes are needed for dim != -1.
    orig_shape = x.shape
    feat = orig_shape[dim]
    pre = math.prod(orig_shape[:dim]) if dim > 0 else 1
    post = math.prod(orig_shape[dim + 1:])
    x3 = x.reshape(pre, feat, post)

    itemsize = jnp.dtype(x.dtype).itemsize
    col_bytes = feat * max(itemsize, 4)    # f32-expanded bytes per lane column

    if post <= 128:
        tn = post                          # full extent is always a legal dim
    else:
        budget_lanes = max(128, (tile_budget_bytes // col_bytes) // 128 * 128)
        want_steps = max(1, _MIN_GRID_STEPS // max(pre, 1))
        steps_lanes = max(128, (post // want_steps) // 128 * 128)
        tn = min(budget_lanes, steps_lanes)
    # TODO(synk): for very large `feat` a (1, feat, tn) block can exceed VMEM;
    # split the reduce axis with an "arbitrary" grid axis + f32 accumulator.

    grid = (pre, pl.cdiv(post, tn))

    out = pl.pallas_call(
        _l2norm_sublane_kernel,
        out_shape=jax.ShapeDtypeStruct((pre, feat, post), out_dtype),
        grid_spec=pltpu.PrefetchScalarGridSpec(
            num_scalar_prefetch=0,
            grid=grid,
            in_specs=[pl.BlockSpec((1, feat, tn), lambda b, j: (b, 0, j))],
            out_specs=pl.BlockSpec((1, feat, tn), lambda b, j: (b, 0, j)),
        ),
        compiler_params=pltpu.CompilerParams(
            dimension_semantics=("parallel", "parallel"),
            vmem_limit_bytes=vmem_limit_bytes,
        ),
    )(x3)

    return out.reshape(orig_shape)


def l2norm(x, dim=-1):
    """L2-normalize `x` along `dim` (x / x.norm(dim=dim, keepdim=True))."""
    dim = dim % x.ndim

    out_dtype = x.dtype
    if not jnp.issubdtype(x.dtype, jnp.floating):
        # Integer outputs of values in [-1, 1] would truncate to garbage.
        x = x.astype(jnp.float32)
        out_dtype = jnp.float32

    tile_budget_bytes, vmem_limit_bytes = _budgets()

    if dim == x.ndim - 1:
        return _l2norm_last(x, out_dtype, tile_budget_bytes, vmem_limit_bytes)
    return _l2norm_non_last(x, dim, out_dtype, tile_budget_bytes,
                            vmem_limit_bytes)


if __name__ == "__main__":
    key = jax.random.PRNGKey(0)
    k1, k2, k3 = jax.random.split(key, 3)

    # Narrow feature dim (feat=32 < 128): lane-dense folded path with the
    # resident block-diagonal mask.
    x = jax.random.normal(k1, (2, 8, 32), dtype=jnp.float32)
    y = jax.block_until_ready(l2norm(x, dim=-1))
    ref = x / jnp.linalg.norm(x, axis=-1, keepdims=True)
    assert y.shape == x.shape and y.dtype == x.dtype
    assert jnp.allclose(y, ref, atol=1e-5, rtol=1e-5)

    # Lane-dense per-row path with a deep (>= 8-step) grid.
    x2 = jax.random.normal(k2, (4, 64, 256), dtype=jnp.float32)
    y2 = jax.block_until_ready(l2norm(x2, dim=-1))
    ref2 = x2 / jnp.linalg.norm(x2, axis=-1, keepdims=True)
    assert y2.shape == x2.shape and y2.dtype == x2.dtype
    assert jnp.allclose(y2, ref2, atol=1e-5, rtol=1e-4)

    # Non-last dim: in-kernel sublane reduce, no moveaxis / HBM transposes.
    x3 = jax.random.normal(k3, (2, 32, 8), dtype=jnp.float32)
    y3 = jax.block_until_ready(l2norm(x3, dim=1))
    ref3 = x3 / jnp.linalg.norm(x3, axis=1, keepdims=True)
    assert y3.shape == x3.shape and y3.dtype == x3.dtype
    assert jnp.allclose(y3, ref3, atol=1e-5, rtol=1e-5)

    print("KERNEL_OK")
</pallas_src>

<mosaic_0001>
module attributes {stable_mosaic.version = 11 : i64} {
  func.func @_l2norm_folded_kernel(%arg0: i32, %arg1: memref<128x128xf32, #tpu.memory_space<vmem>>, %arg2: memref<4x128xf32, #tpu.memory_space<vmem>>, %arg3: memref<4x128xf32, #tpu.memory_space<vmem>>) attributes {dimension_semantics = [#tpu.dimension_semantics<parallel>], iteration_bounds = array<i64: 1>, scalar_prefetch = 0 : i64, scratch_operands = 0 : i64, tpu.core_type = #tpu.core_type<tc>, window_params = [{pipeline_mode = #tpu.pipeline_mode<synchronous>, transform_indices = @transform_0, window_bounds = array<i64: 128, 128>}, {transform_indices = @transform_1, window_bounds = array<i64: 4, 128>}, {transform_indices = @transform_2, window_bounds = array<i64: 4, 128>}]} {
    %c0 = arith.constant 0 : index
    %c0_0 = arith.constant 0 : index
    %0 = vector.load %arg2[%c0, %c0_0] : memref<4x128xf32, #tpu.memory_space<vmem>>, vector<4x128xf32>
    %1 = arith.mulf %0, %0 : vector<4x128xf32>
    %c0_1 = arith.constant 0 : index
    %c0_2 = arith.constant 0 : index
    %2 = vector.load %arg1[%c0_1, %c0_2] : memref<128x128xf32, #tpu.memory_space<vmem>>, vector<128x128xf32>
    %cst = arith.constant dense<0.000000e+00> : vector<4x128xf32>
    %3 = tpu.matmul %1, %2, %cst {dimension_numbers = #tpu.dot_dimension_numbers<[1], [0], [0], [1], [0, 0, 1, 1], [], []>, precision = #tpu.contract_precision<fp32>} : vector<4x128xf32>, vector<128x128xf32>, vector<4x128xf32> -> vector<4x128xf32>
    %4 = math.rsqrt %3 : vector<4x128xf32>
    %5 = arith.mulf %0, %4 : vector<4x128xf32>
    %c0_3 = arith.constant 0 : index
    %c0_4 = arith.constant 0 : index
    %6 = vector.load %arg3[%c0_3, %c0_4] : memref<4x128xf32, #tpu.memory_space<vmem>>, vector<4x128xf32>
    tpu.vector_store %arg3[%c0_3, %c0_4], %5 {strides = array<i32>} : memref<4x128xf32, #tpu.memory_space<vmem>>, vector<4x128xf32>,
    return
  }
  func.func @transform_0(%arg0: i32) -> (i32, i32) {
    %c0_i32 = arith.constant 0 : i32
    %c0_i32_0 = arith.constant 0 : i32
    %c0_i32_1 = arith.constant 0 : i32
    return %c0_i32, %c0_i32_0 : i32, i32
  }
  func.func @transform_1(%arg0: i32) -> (i32, i32) {
    %c0_i32 = arith.constant 0 : i32
    %c0_i32_0 = arith.constant 0 : i32
    return %arg0, %c0_i32 : i32, i32
  }
  func.func @transform_2(%arg0: i32) -> (i32, i32) {
    %c0_i32 = arith.constant 0 : i32
    %c0_i32_0 = arith.constant 0 : i32
    return %arg0, %c0_i32 : i32, i32
  }
}

</mosaic_0001>

<bundles_post_ra>
// kernel: tpu_custom_call.1
= control target key start
LH: loop header
LB: loop body
LE: loop exit
PB: predicated region body
PF: predicated region fallthrough
CT: control target
= control target key end

     0   :  { %7 = vsyncpa [#allocation3], 0  ;;  %s1574_s0 = inlined_call_operand.hbm [shape: f32[128,128], index: 0, kind: input, shape index: {}]   ;;  %s1575_s1 = inlined_call_operand.hbm [shape: f32[4,128], index: 1, kind: input, shape index: {}]   ;;  %s1576_s2 = inlined_call_operand.hbm [shape: f32[4,128], index: 2, kind: output, shape index: {}]  }
   0x1   :  { %8 = vsyncpa [#allocation6], 0 }
   0x2   :  { %9 = vsyncpa [#allocation4], 0  ;;  %s1263_s9 = smov [#allocation2]   ;;  %s1191_s13 = scalar_lea.hbm %s1574_s0, 2048 }
   0x3   :  { %s15_s10 = sshll.u32 %s1263_s9, 4  ;;  %p1192_p0 = scmp.ne.s32.totalorder %s1574_s0, %s1191_s13  ;;  %s16_s10 = int_to_ptr.vmem [resolvable:$true] %s15_s10 }
   0x4   :  { %p1195_p1 = scmp.lt.u32.totalorder %s1191_s13, %s1574_s0 }
   0x6   :  { %p1197_p2 = pnand %p1195_p1, %p1192_p0 }
   0x8   :  { %1200 = shalt.err (!%p1197_p2)
}
   0x9   :  { %s1201_s18 = scalar_lea.vmem %s16_s10, 2048  ;;  %p1206_p4 = scmp.lt.s32.totalorder %s16_s10, %s16_s10 }
   0xa   :  { %p1202_p3 = scmp.ne.s32.totalorder %s16_s10, %s1201_s18  ;;  %p1207_p5 = scmp.lt.s32.totalorder %s1201_s18, %s1201_s18 }
   0xc   :  { %p1208_p6 = por %p1207_p5, %p1206_p4 }
   0xe   :  { %p1209_p7 = pnand %p1208_p6, %p1202_p3 }
  0x10   :  { %1212 = shalt.err (!%p1209_p7)
}
  0x11   :  { %s1264_s19 = smov 128   ;;  %s1265_s20 = smov 8  }
  0x12   :  { %21 = dma.hbm_to_vmem [thread:$0]  %s1574_s0, 2048, %s16_s10, [#allocation3], %s1264_s19, %s1264_s19, %s1265_s20  }
  0x13   :  { %s1266_s23 = smov [#allocation5]   ;;  %s1213_s27 = scalar_lea.hbm %s1575_s1, 64 }
  0x14   :  { %s28_s24 = sshll.u32 %s1266_s23, 4  ;;  %p1214_p8 = scmp.ne.s32.totalorder %s1575_s1, %s1213_s27  ;;  %s29_s24 = int_to_ptr.vmem [resolvable:$true] %s28_s24 }
  0x15   :  { %p1217_p9 = scmp.lt.u32.totalorder %s1213_s27, %s1575_s1 }
  0x17   :  { %p1219_p10 = pnand %p1217_p9, %p1214_p8 }
  0x19   :  { %1222 = shalt.err (!%p1219_p10)
}
  0x1a   :  { %s1223_s4 = scalar_lea.vmem %s29_s24, 64  ;;  %p1228_p12 = scmp.lt.s32.totalorder %s29_s24, %s29_s24 }
  0x1b   :  { %p1224_p11 = scmp.ne.s32.totalorder %s29_s24, %s1223_s4  ;;  %p1229_p13 = scmp.lt.s32.totalorder %s1223_s4, %s1223_s4 }
  0x1d   :  { %p1230_p0 = por %p1229_p13, %p1228_p12 }
  0x1f   :  { %p1231_p1 = pnand %p1230_p0, %p1224_p11 }
  0x21   :  { %1234 = shalt.err (!%p1231_p1)
}
  0x22   :  { %31 = dma.hbm_to_vmem [thread:$0]  %s1575_s1, 64, %s29_s24, [#allocation6]  }
  0x23   :  { %1257 = dma.done.wait [#allocation3], 2048  }
  0x24   :  { %1258 = vsyncadd [#allocation3], 4294965248 }
  0x25   :  { %1259 = dma.done.wait [#allocation6], 64  }
  0x26   :  { %1260 = vsyncadd [#allocation6], 4294967232  ;;  %v1267_v0 = vmov 0.0|0.0   ;;  %vm1268_vm0 = vmmov 0   ;;  %v1269_v1 = vmov 0.0   ;;  %v40_v2 = vld [vmem:[#allocation2] sm:$0xff] }
  0x27   :  { %1028 = vmatprep.subr.bf16.mxu1 %v1267_v0  ;;  %1100 = vmatprep.subr.bf16.mxu0 %v1267_v0  ;;  %v41_v3 = vld [vmem:[#allocation2 + $0x8] sm:$0xff]  ;;  %v42_v4 = vld [vmem:[#allocation2 + $0x10] sm:$0xff]  ;;  %v57_v5 = vand.u32 4294901760, %v40_v2  ;;  %v43_v7 = vld [vmem:[#allocation2 + $0x18] sm:$0xff]  ;;  %s1270_s1 = smov [#allocation7]  }
  0x28   :  { %850 = vmatprep.mubr.msk.f32.mxu1 %vm1268_vm0, %v1269_v1  ;;  %955 = vmatprep.mubr.msk.f32.mxu0 %vm1268_vm0, %v1269_v1  ;;  %v60_v6 = vand.u32 4294901760, %v41_v3  ;;  %v63_v8 = vand.u32 4294901760, %v42_v4  ;;  %v66_v9 = vand.u32 4294901760, %v43_v7  ;;  %v44_v10 = vld [vmem:[#allocation2 + $0x20] sm:$0xff]  ;;  %v45_v11 = vld [vmem:[#allocation2 + $0x28] sm:$0xff]  ;;  %v46_v16 = vld [vmem:[#allocation2 + $0x30] sm:$0xff] }
  0x29   :  { %v69_v14 = vand.u32 4294901760, %v44_v10  ;;  %v72_v15 = vand.u32 4294901760, %v45_v11  ;;  %v47_v17 = vld [vmem:[#allocation2 + $0x38] sm:$0xff]  ;;  %v75_v19 = vand.u32 4294901760, %v46_v16  ;;  %v1328_v21 = vld [vmem:[#allocation5] sm:$0xf]  ;;  %v1350_v30 = vsub.f32 %v40_v2, %v57_v5 }
  0x2a   :  { %v1316_v12 = vpack.c.bf16 %v60_v6, %v57_v5  ;;  %v1320_v13 = vpack.c.bf16 %v66_v9, %v63_v8  ;;  %v78_v20 = vand.u32 4294901760, %v47_v17  ;;  %v1332_v22 = vld [vmem:[#allocation2 + $0x40] sm:$0xff]  ;;  %v1334_v23 = vld [vmem:[#allocation2 + $0x48] sm:$0xff]  ;;  %v39_v24 = vmul.f32 %v1328_v21, %v1328_v21  ;;  %v1346_v28 = vld [vmem:[#allocation2 + $0x50] sm:$0xff]  ;;  %s706_s6 = sshll.u32 %s1270_s1, 4  ;;  %s707_s6 = int_to_ptr.vmem [resolvable:$true] %s706_s6 }
  0x2b   :  { %v1326_v18 = vpack.c.bf16 %v72_v15, %v69_v14  ;;  %v81_v26 = vand.u32 4294901760, %v1332_v22  ;;  %v84_v27 = vand.u32 4294901760, %v1334_v23  ;;  %v1348_v29 = vld [vmem:[#allocation2 + $0x58] sm:$0xff]  ;;  %v1354_v32 = vsub.f32 %v41_v3, %v60_v6  ;;  %v1362_v36 = vld [vmem:[#allocation2 + $0x60] sm:$0xff]  ;;  %v1366_v37 = vld [vmem:[#allocation2 + $0x68] sm:$0xff]  ;;  %s1235_s7 = scalar_lea.vmem %s707_s6, 64  ;;  %p1240_p3 = scmp.lt.s32.totalorder %s707_s6, %s707_s6 }
  0x2c   :  { %1030 = vmatpush3.bf16.msra.mxu1 %v1316_v12  ;;  %1102 = vmatpush3.bf16.msra.mxu0 %v1316_v12  ;;  %v1340_v25 = vpack.c.bf16 %v78_v20, %v75_v19  ;;  %v1352_v31 = vand.u32 4294901760, %v39_v24  ;;  %v87_v34 = vand.u32 4294901760, %v1346_v28  ;;  %v90_v35 = vand.u32 4294901760, %v1348_v29  ;;  %v1385_v44 = vld [vmem:[#allocation2 + $0x70] sm:$0xff]  ;;  %v1387_v45 = vld [vmem:[#allocation2 + $0x78] sm:$0xff]  ;;  %p1236_p2 = scmp.ne.s32.totalorder %s707_s6, %s1235_s7  ;;  %p1241_p4 = scmp.lt.s32.totalorder %s1235_s7, %s1235_s7 }
  0x2d   :  { %1031 = vmatprep.subr.bf16.mxu1 %v1267_v0  ;;  %1103 = vmatprep.subr.bf16.mxu0 %v1267_v0  ;;  %v1358_v33 = vpack.c.bf16 %v84_v27, %v81_v26  ;;  %v1368_v38 = vsub.f32 %v42_v4, %v63_v8  ;;  %v1370_v39 = vsub.f32 %v43_v7, %v66_v9  ;;  %v93_v40 = vand.u32 4294901760, %v1362_v36 }
  0x2e   :  { %v1374_v41 = vsub.f32 %v39_v24, %v1352_v31  ;;  %v1382_v42 = vpack.c.bf16 %v90_v35, %v87_v34  ;;  %v96_v43 = vand.u32 4294901760, %v1366_v37  ;;  %v150_v46 = vand.u32 4294901760, %v1350_v30  ;;  %p1242_p5 = por %p1241_p4, %p1240_p3 }
  0x2f   :  { %v157_v47 = vand.u32 4294901760, %v1354_v32  ;;  %v1393_v48 = vsub.f32 %v44_v10, %v69_v14  ;;  %v1395_v49 = vsub.f32 %v45_v11, %v72_v15  ;;  %v99_v50 = vand.u32 4294901760, %v1385_v44 }
  0x30   :  { %1033 = vmatpush3.bf16.msra.mxu1 %v1320_v13  ;;  %1105 = vmatpush3.bf16.msra.mxu0 %v1320_v13  ;;  %v102_v51 = vand.u32 4294901760, %v1387_v45  ;;  %v139_v52 = vand.u32 4294901760, %v1374_v41  ;;  %v164_v53 = vand.u32 4294901760, %v1368_v38  ;;  %v1407_v54 = vpack.c.bf16 %v96_v43, %v93_v40  ;;  %p1243_p6 = pnand %p1242_p5, %p1236_p2 }
  0x31   :  { %1034 = vmatprep.subr.bf16.mxu1 %v1267_v0  ;;  %1106 = vmatprep.subr.bf16.mxu0 %v1267_v0  ;;  %v151_v55 = vsub.f32 %v1350_v30, %v150_v46  ;;  %v158_v56 = vsub.f32 %v1354_v32, %v157_v47  ;;  %v171_v57 = vand.u32 4294901760, %v1370_v39  ;;  %v1414_v58 = vsub.f32 %v46_v16, %v75_v19 }
  0x32   :  { %v1416_v59 = vsub.f32 %v47_v17, %v78_v20  ;;  %v140_v60 = vsub.f32 %v1374_v41, %v139_v52  ;;  %v165_v61 = vsub.f32 %v1368_v38, %v164_v53  ;;  %v178_v62 = vand.u32 4294901760, %v1393_v48 }
  0x33   :  { %v185_v63 = vand.u32 4294901760, %v1395_v49  ;;  %v1428_v2 = vpack.c.bf16 %v102_v51, %v99_v50  ;;  %v152_v3 = vand.u32 4294901760, %v151_v55  ;;  %v159_v4 = vand.u32 4294901760, %v158_v56 }
  0x34   :  { %1036 = vmatpush3.bf16.msra.mxu1 %v1326_v18  ;;  %1108 = vmatpush3.bf16.msra.mxu0 %v1326_v18  ;;  %v172_v5 = vsub.f32 %v1370_v39, %v171_v57  ;;  %v1434_v6 = vsub.f32 %v1332_v22, %v81_v26  ;;  %v1437_v7 = vsub.f32 %v1334_v23, %v84_v27  ;;  %v141_v9 = vand.u32 4294901760, %v140_v60 }
  0x35   :  { %1037 = vmatprep.subr.bf16.mxu1 %v1267_v0  ;;  %1109 = vmatprep.subr.bf16.mxu0 %v1267_v0  ;;  %v1125_v8 = vpack.c.bf16 %v157_v47, %v150_v46  ;;  %v166_v10 = vand.u32 4294901760, %v165_v61  ;;  %v179_v11 = vsub.f32 %v1393_v48, %v178_v62  ;;  %v186_v14 = vsub.f32 %v1395_v49, %v185_v63 }
  0x36   :  { %v1053_v15 = vpack.c.bf16 %v159_v4, %v152_v3  ;;  %v173_v16 = vand.u32 4294901760, %v172_v5  ;;  %v192_v17 = vand.u32 4294901760, %v1414_v58  ;;  %v199_v19 = vand.u32 4294901760, %v1416_v59 }
  0x37   :  { %v1450_v20 = vsub.f32 %v1346_v28, %v87_v34  ;;  %v1455_v22 = vsub.f32 %v1348_v29, %v90_v35  ;;  %v1128_v23 = vpack.c.bf16 %v171_v57, %v164_v53  ;;  %v180_v24 = vand.u32 4294901760, %v179_v11 }
  0x38   :  { %1039 = vmatpush3.bf16.msra.mxu1 %v1340_v25  ;;  %1111 = vmatpush3.bf16.msra.mxu0 %v1340_v25  ;;  %v187_v26 = vand.u32 4294901760, %v186_v14  ;;  %v206_v27 = vand.u32 4294901760, %v1434_v6  ;;  %v1056_v46 = vpack.c.bf16 %v173_v16, %v166_v10  ;;  %v193_v47 = vsub.f32 %v1414_v58, %v192_v17 }
  0x39   :  { %1040 = vmatprep.subr.bf16.mxu1 %v1267_v0  ;;  %1112 = vmatprep.subr.bf16.mxu0 %v1267_v0  ;;  %v200_v28 = vsub.f32 %v1416_v59, %v199_v19  ;;  %v213_v34 = vand.u32 4294901760, %v1437_v7  ;;  %v1466_v29 = vsub.f32 %v1362_v36, %v93_v40  ;;  %v1471_v35 = vsub.f32 %v1366_v37, %v96_v43 }
  0x3a   :  { %v1131_v53 = vpack.c.bf16 %v185_v63, %v178_v62  ;;  %v207_v55 = vsub.f32 %v1434_v6, %v206_v27  ;;  %v220_v56 = vand.u32 4294901760, %v1450_v20  ;;  %v194_v36 = vand.u32 4294901760, %v193_v47 }
  0x3b   :  { %v201_v40 = vand.u32 4294901760, %v200_v28  ;;  %v214_v57 = vsub.f32 %v1437_v7, %v213_v34  ;;  %v227_v37 = vand.u32 4294901760, %v1455_v22  ;;  %v1486_v43 = vsub.f32 %v1385_v44, %v99_v50 }
  0x3c   :  { %1042 = vmatpush3.bf16.msra.mxu1 %v1358_v33  ;;  %1114 = vmatpush3.bf16.msra.mxu0 %v1358_v33  ;;  %v1491_v60 = vsub.f32 %v1387_v45, %v102_v51  ;;  %v1134_v61 = vpack.c.bf16 %v199_v19, %v192_v17  ;;  %v208_v62 = vand.u32 4294901760, %v207_v55  ;;  %v221_v63 = vsub.f32 %v1450_v20, %v220_v56 }
  0x3d   :  { %1043 = vmatprep.subr.bf16.mxu1 %v1267_v0  ;;  %1115 = vmatprep.subr.bf16.mxu0 %v1267_v0  ;;  %v234_v3 = vand.u32 4294901760, %v1466_v29  ;;  %v1062_v4 = vpack.c.bf16 %v201_v40, %v194_v36  ;;  %v215_v5 = vand.u32 4294901760, %v214_v57  ;;  %v241_v44 = vand.u32 4294901760, %v1471_v35 }
  0x3e   :  { %v1137_v45 = vpack.c.bf16 %v213_v34, %v206_v27  ;;  %v222_v50 = vand.u32 4294901760, %v221_v63  ;;  %v1140_v16 = vpack.c.bf16 %v227_v37, %v220_v56  ;;  %v1080_v55 = vpack.c.bf16 %v1370_v39, %v1368_v38 }
  0x3f   :  { %v235_v51 = vsub.f32 %v1466_v29, %v234_v3  ;;  %v1065_v10 = vpack.c.bf16 %v215_v5, %v208_v62  ;;  %v242_v14 = vsub.f32 %v1471_v35, %v241_v44 }
  0x40   :  { %1045 = vmatpush3.bf16.msra.mxu1 %v1382_v42  ;;  %1117 = vmatpush3.bf16.msra.mxu0 %v1382_v42 }
  0x41   :  { %1046 = vmatprep.subr.bf16.mxu1 %v1267_v0  ;;  %1118 = vmatprep.subr.bf16.mxu0 %v1267_v0  ;;  %v236_v17 = vand.u32 4294901760, %v235_v51 }
  0x44   :  { %1048 = vmatpush3.bf16.msra.mxu1 %v1407_v54  ;;  %1120 = vmatpush3.bf16.msra.mxu0 %v1407_v54 }
  0x45   :  { %1049 = vmatprep.subr.bf16.mxu1 %v1267_v0  ;;  %1121 = vmatprep.subr.bf16.mxu0 %v1267_v0 }
  0x48   :  { %1051 = vmatpush3.bf16.msra.mxu1 %v1428_v2  ;;  %1123 = vmatpush3.bf16.msra.mxu0 %v1428_v2 }
  0x49   :  { %1052 = vmatprep.subr.bf16.mxu1 %v1267_v0  ;;  %1124 = vmatprep.subr.bf16.mxu0 %v1267_v0 }
  0x4b   :  { %851 = vmatmul.mubr.f32.vlgmr.msra.gmra.mrb[0].mxu1 %v141_v9  ;;  %956 = vmatmul.mubr.f32.vlgmr.msra.gmra.mrb[0].mxu0 %v139_v52  ;;  %v1059_v52 = vpack.c.bf16 %v187_v26, %v180_v24  ;;  %v248_v9 = vand.u32 4294901760, %v1486_v43 }
  0x4c   :  { %1054 = vmatpush3.bf16.msra.mxu1 %v1053_v15  ;;  %1126 = vmatpush3.bf16.msra.mxu0 %v1125_v8  ;;  %v228_v8 = vsub.f32 %v1455_v22, %v227_v37  ;;  %v255_v15 = vand.u32 4294901760, %v1491_v60 }
  0x4d   :  { %1055 = vmatprep.subr.bf16.mxu1 %v1267_v0  ;;  %1127 = vmatprep.subr.bf16.mxu0 %v1267_v0  ;;  %v249_v24 = vsub.f32 %v1486_v43, %v248_v9 }
  0x4e   :  { %885 = vmatprep.mubr.msk.f32.mxu1 %vm1268_vm0, %v1269_v1  ;;  %990 = vmatprep.mubr.msk.f32.mxu0 %vm1268_vm0, %v1269_v1  ;;  %v229_v11 = vand.u32 4294901760, %v228_v8  ;;  %v256_v26 = vsub.f32 %v1491_v60, %v255_v15 }
  0x4f   :  { %v250_v47 = vand.u32 4294901760, %v249_v24 }
  0x50   :  { %1057 = vmatpush3.bf16.msra.mxu1 %v1056_v46  ;;  %1129 = vmatpush3.bf16.msra.mxu0 %v1128_v23  ;;  %v1068_v19 = vpack.c.bf16 %v229_v11, %v222_v50  ;;  %v243_v23 = vand.u32 4294901760, %v242_v14  ;;  %v1143_v46 = vpack.c.bf16 %v241_v44, %v234_v3  ;;  %v257_v28 = vand.u32 4294901760, %v256_v26 }
  0x51   :  { %1058 = vmatprep.subr.bf16.mxu1 %v1267_v0  ;;  %1130 = vmatprep.subr.bf16.mxu0 %v1267_v0 }
  0x52   :  { %v1071_v27 = vpack.c.bf16 %v243_v23, %v236_v17  ;;  %v1074_v34 = vpack.c.bf16 %v257_v28, %v250_v47 }
  0x54   :  { %1060 = vmatpush3.bf16.msra.mxu1 %v1059_v52  ;;  %1132 = vmatpush3.bf16.msra.mxu0 %v1131_v53  ;;  %v1146_v52 = vpack.c.bf16 %v255_v15, %v248_v9  ;;  %v1077_v53 = vpack.c.bf16 %v1354_v32, %v1350_v30  ;;  %v1083_v30 = vpack.c.bf16 %v1395_v49, %v1393_v48 }
  0x55   :  { %1061 = vmatprep.subr.bf16.mxu1 %v1267_v0  ;;  %1133 = vmatprep.subr.bf16.mxu0 %v1267_v0 }
  0x58   :  { %1063 = vmatpush3.bf16.msra.mxu1 %v1062_v4  ;;  %1135 = vmatpush3.bf16.msra.mxu0 %v1134_v61 }
  0x59   :  { %1064 = vmatprep.subr.bf16.mxu1 %v1267_v0  ;;  %1136 = vmatprep.subr.bf16.mxu0 %v1267_v0 }
  0x5c   :  { %1066 = vmatpush3.bf16.msra.mxu1 %v1065_v10  ;;  %1138 = vmatpush3.bf16.msra.mxu0 %v1137_v45 }
  0x5d   :  { %1067 = vmatprep.subr.bf16.mxu1 %v1267_v0  ;;  %1139 = vmatprep.subr.bf16.mxu0 %v1267_v0 }
  0x60   :  { %1069 = vmatpush3.bf16.msra.mxu1 %v1068_v19  ;;  %1141 = vmatpush3.bf16.msra.mxu0 %v1140_v16 }
  0x61   :  { %1070 = vmatprep.subr.bf16.mxu1 %v1267_v0  ;;  %1142 = vmatprep.subr.bf16.mxu0 %v1267_v0 }
  0x64   :  { %1072 = vmatpush3.bf16.msra.mxu1 %v1071_v27  ;;  %1144 = vmatpush3.bf16.msra.mxu0 %v1143_v46 }
  0x65   :  { %1073 = vmatprep.subr.bf16.mxu1 %v1267_v0  ;;  %1145 = vmatprep.subr.bf16.mxu0 %v1267_v0 }
  0x68   :  { %1075 = vmatpush3.bf16.msra.mxu1 %v1074_v34  ;;  %1147 = vmatpush3.bf16.msra.mxu0 %v1146_v52 }
  0x69   :  { %1076 = vmatprep.subr.bf16.mxu1 %v1267_v0  ;;  %1148 = vmatprep.subr.bf16.mxu0 %v1267_v0 }
  0x6b   :  { %886 = vmatmul.mubr.f32.vlgmr.msra.gmra.mrb[0].mxu1 %v1352_v31  ;;  %991 = vmatmul.mubr.f32.vlgmr.msra.gmra.mrb[0].mxu0 %v1352_v31 }
  0x6c   :  { %1078 = vmatpush3.bf16.msra.mxu1 %v1077_v53  ;;  %1150 = vmatpush3.bf16.msra.mxu0 %v1316_v12  ;;  %v1086_v12 = vpack.c.bf16 %v1416_v59, %v1414_v58 }
  0x6d   :  { %1079 = vmatprep.subr.bf16.mxu1 %v1267_v0  ;;  %1151 = vmatprep.subr.bf16.mxu0 %v1267_v0 }
  0x6e   :  { %920 = vmatprep.mubr.msk.f32.mxu1 %vm1268_vm0, %v1269_v1  ;;  %1025 = vmatprep.mubr.msk.f32.mxu0 %vm1268_vm0, %v1269_v1  ;;  %v1089_v1 = vpack.c.bf16 %v1437_v7, %v1434_v6 }
  0x70   :  { %1081 = vmatpush3.bf16.msra.mxu1 %v1080_v55  ;;  %1153 = vmatpush3.bf16.msra.mxu0 %v1320_v13  ;;  %v1092_v13 = vpack.c.bf16 %v1455_v22, %v1450_v20 }
  0x71   :  { %1082 = vmatprep.subr.bf16.mxu1 %v1267_v0  ;;  %1154 = vmatprep.subr.bf16.mxu0 %v1267_v0 }
  0x74   :  { %1084 = vmatpush3.bf16.msra.mxu1 %v1083_v30  ;;  %1156 = vmatpush3.bf16.msra.mxu0 %v1326_v18  ;;  %v1095_v18 = vpack.c.bf16 %v1471_v35, %v1466_v29 }
  0x75   :  { %1085 = vmatprep.subr.bf16.mxu1 %v1267_v0  ;;  %1157 = vmatprep.subr.bf16.mxu0 %v1267_v0 }
  0x78   :  { %1087 = vmatpush3.bf16.msra.mxu1 %v1086_v12  ;;  %1159 = vmatpush3.bf16.msra.mxu0 %v1340_v25  ;;  %v1098_v25 = vpack.c.bf16 %v1491_v60, %v1486_v43 }
  0x79   :  { %1088 = vmatprep.subr.bf16.mxu1 %v1267_v0  ;;  %1160 = vmatprep.subr.bf16.mxu0 %v1267_v0 }
  0x7c   :  { %1090 = vmatpush3.bf16.msra.mxu1 %v1089_v1  ;;  %1162 = vmatpush3.bf16.msra.mxu0 %v1358_v33 }
  0x7d   :  { %1091 = vmatprep.subr.bf16.mxu1 %v1267_v0  ;;  %1163 = vmatprep.subr.bf16.mxu0 %v1267_v0 }
  0x80   :  { %1093 = vmatpush3.bf16.msra.mxu1 %v1092_v13  ;;  %1165 = vmatpush3.bf16.msra.mxu0 %v1382_v42 }
  0x81   :  { %1094 = vmatprep.subr.bf16.mxu1 %v1267_v0  ;;  %1166 = vmatprep.subr.bf16.mxu0 %v1267_v0 }
  0x84   :  { %1096 = vmatpush3.bf16.msra.mxu1 %v1095_v18  ;;  %1168 = vmatpush3.bf16.msra.mxu0 %v1407_v54 }
  0x85   :  { %1097 = vmatprep.subr.bf16.mxu1 %v1267_v0  ;;  %1169 = vmatprep.subr.bf16.mxu0 %v1267_v0 }
  0x88   :  { %1099 = vmatpush3.bf16.msra.mxu1 %v1098_v25  ;;  %1171 = vmatpush3.bf16.msra.mxu0 %v1428_v2 }
  0x8b   :  { %921 = vmatmul.mubr.f32.vlgmr.msra.gmra.mrb[0].mxu1 %v1374_v41  ;;  %1026 = vmatmul.mubr.f32.vlgmr.msra.gmra.mrb[0].mxu0 %v1352_v31 }
 0x15e   :  { %v398_v32 = vpop.f32.mrb[0].mxu1  ;;  %v693_v33 = vpop.f32.mrb[0].mxu0 }
 0x15f   :  { %v1172_v38 = vadd.f32 %v693_v33, %v398_v32  ;;  %v922_v39 = vpop.f32.mrb[1].mxu1  ;;  %v1027_v42 = vpop.f32.mrb[1].mxu0 }
 0x161   :  { %1189 = vrsqrt.f32 %v1172_v38 }
 0x16b   :  { %v1190_v48 = vpop.eup %1189 }
 0x16c   :  { %v698_v49 = vmul.f32 %v1190_v48, %v1328_v21 }
 0x16e   :  { %699 = vst [vmem:[#allocation7] sm:$0xf] %v698_v49 }
 0x16f   :  { %1246 = shalt.err (!%p1243_p6)
}
 0x170   :  { %s1247_s10 = scalar_lea.hbm %s1576_s2, 64 }
 0x171   :  { %p1248_p7 = scmp.ne.s32.totalorder %s1576_s2, %s1247_s10  ;;  %p1251_p8 = scmp.lt.u32.totalorder %s1247_s10, %s1576_s2 }
 0x173   :  { %p1253_p9 = pnand %p1251_p8, %p1248_p7 }
 0x175   :  { %1256 = shalt.err (!%p1253_p9)
}
 0x176   :  { %709 = dma.vmem_to_hbm [thread:$0]  %s707_s6, 64, %s1576_s2, [#allocation4]  }
 0x177   :  { %1261 = dma.done.wait [#allocation4], 64  }
 0x178   :  { %1262 = vsyncadd [#allocation4], 4294967232 }
 0x179   :  { %713 = vsyncpa [#allocation3], 1 }
 0x17a   :  { %714 = vsyncpa [#allocation6], 1 }
 0x17b   :  { %715 = vsyncpa [#allocation4], 1 }

</bundles_post_ra>
